<compile_context>
chip_gen: v6e
topology: v6e:2x2x1
jax: 0.10.0
libtpu: 0.0.40
codegen_flags: <defaults>
</compile_context>

<pallas_src>
import functools

import jax
import jax.numpy as jnp
from jax.experimental import pallas as pl
from jax.experimental.pallas import tpu as pltpu

_NBINS = 256
_EPS = 1e-8


def _sge_stream_kernel(x_ref, xn_ref, *, inv_chw):
    """Accumulate mean_c(x * spatial_mean(x)) for one (batch, channel-block)."""
    ci = pl.program_id(1)  # channel-block step (innermost, reduction axis)

    @pl.when(ci == 0)
    def _():
        xn_ref[...] = jnp.zeros_like(xn_ref)

    x_blk = x_ref[0]                                   # (c_blk, hw), caller dtype
    # Per-channel spatial sum on the XLU (lane reduce) -- no ones vector and no
    # N=1 matvec on the MXU.
    row_sum = jnp.sum(x_blk, axis=-1, keepdims=True)   # (c_blk, 1)
    # Fold 1/HW (spatial mean) and 1/C (channel mean) into the weights and fuse
    # the per-element multiply into the channel-reduction matmul:
    #   xn[s] += sum_c w[c] * x[c, s],   w[c] = rowsum[c] / (HW * C)
    w = (row_sum.astype(jnp.float32) * inv_chw).astype(x_blk.dtype)
    w_row = w.reshape(1, -1)                           # (1, c_blk)
    xn_ref[0] += jnp.dot(w_row, x_blk,
                         preferred_element_type=jnp.float32)   # (1, hw) f32


def _vmem_budget():
    """Generation-aware tile / VMEM targets (v7x has only 64 MiB per core)."""
    try:
        cap = int(pltpu.get_tpu_info().vmem_capacity_bytes)
    except Exception:
        cap = 64 << 20                      # assume the smallest (v7x) if unknown
    limit = min((cap * 3) // 4, 96 << 20)   # leave headroom below physical VMEM
    target_tile = min(limit // 4, 32 << 20)  # 2x double-buffered tiles fit easily
    return target_tile, limit


def _pick_c_block(c, hw, itemsize, target_bytes):
    """Largest channel block (divisor of C) whose streamed tile fits the budget."""
    if c * hw * itemsize <= target_bytes:
        return c
    sub = max(8, 32 // itemsize)            # 8 for f32, 16 for bf16, 32 for int8
    max_rows = max(1, target_bytes // (hw * itemsize))
    cand = [d for d in range(sub, min(max_rows, c) + 1, sub) if c % d == 0]
    if cand:
        return max(cand)
    # No sublane-aligned divisor fits: fall back to the largest divisor that
    # still respects the budget (never exceeds it).
    # TODO(synk): use a cdiv grid + masked last channel block for awkward/prime C.
    cand = [d for d in range(1, min(max_rows, c) + 1) if c % d == 0]
    return max(cand)


def spatial_group_enhance(x, weight=None, bias=None):
    """Pallas implementation of SpatialGroupEnhance.forward.

    `weight` (zeros (1,1,1,1)) and `bias` (ones (1,1,1,1)) are module parameters
    the PyTorch forward never uses; accepted for signature parity.
    """
    b, c, h, w = x.shape
    hw = h * w
    # Keep the caller's dtype (bf16 halves HBM traffic); MXU accumulates in f32.
    x_r = x.reshape(b, c, hw)

    target_tile, vmem_limit = _vmem_budget()
    c_blk = _pick_c_block(c, hw, x_r.dtype.itemsize, target_tile)
    assert c % c_blk == 0
    grid = (b, c // c_blk)

    kernel = functools.partial(_sge_stream_kernel, inv_chw=1.0 / float(hw * c))

    xn = pl.pallas_call(
        kernel,
        out_shape=jax.ShapeDtypeStruct((b, 1, hw), jnp.float32),
        grid_spec=pltpu.PrefetchScalarGridSpec(
            num_scalar_prefetch=0,
            grid=grid,
            in_specs=[pl.BlockSpec((1, c_blk, hw), lambda bi, ci: (bi, ci, 0))],
            out_specs=pl.BlockSpec((1, 1, hw), lambda bi, ci: (bi, 0, 0)),
        ),
        compiler_params=pltpu.CompilerParams(
            # Batch blocks are disjoint -> megacore-parallel on v7x; the channel
            # axis revisits the same output block (accumulator) -> arbitrary.
            dimension_semantics=("parallel", "arbitrary"),
            vmem_limit_bytes=int(vmem_limit),
        ),
    )(x_r)

    xn = xn[:, 0, :]                                   # (B, HW) == mean_c(x*pooled)

    # ---- O(B*HW) tail in plain JAX (per perf review: no (256, HW) one-hot in
    # VMEM, no cross-batch scratch in the kernel) ------------------------------
    entro = jnp.mean(xn, axis=0)                       # (HW,)
    mx = jnp.max(entro)
    mn = jnp.min(entro)
    # NOTE: mirrors torch exactly -- NaN if the entropy map is constant.
    en = (entro - mn) / (mx - mn) * 255.0

    # torch.histc(en, bins=256, min=0, max=255): width = 255/256; values equal
    # to 255 land in the last bin (handled by the clip).
    idx = jnp.clip(jnp.floor(en * (float(_NBINS) / 255.0)), 0.0,
                   float(_NBINS - 1)).astype(jnp.int32)
    counts = jnp.zeros((_NBINS,), jnp.float32).at[idx].add(1.0)
    his = counts / float(hw)

    ent = jnp.sum(his * -jnp.log(his + _EPS))
    ef = ent / jnp.count_nonzero(his).astype(jnp.float32)
    mean_sig = jnp.mean(jax.nn.sigmoid(xn))
    return mean_sig + ef * 10.0


def _reference(x):
    """Pure-JAX reference mirroring the PyTorch forward (for sanity check)."""
    b, c, h, w = x.shape
    x = x.astype(jnp.float32)
    pooled = jnp.mean(x, axis=(2, 3), keepdims=True)
    xn = x * pooled
    xn = jnp.mean(xn, axis=1, keepdims=True)
    entro = jnp.mean(xn, axis=0).squeeze().reshape(-1)
    mx = jnp.max(entro)
    mn = jnp.min(entro)
    en = (entro - mn) / (mx - mn) * 255.0
    width = 255.0 / _NBINS
    idx = jnp.clip(jnp.floor(en / width).astype(jnp.int32), 0, _NBINS - 1)
    counts = jnp.zeros((_NBINS,), jnp.float32).at[idx].add(1.0)
    his = counts / (h * w)
    ef = jnp.sum(his * -jnp.log(his + _EPS)) / jnp.sum(his > 0)
    return jnp.mean(jax.nn.sigmoid(xn)) + ef * 10.0


if __name__ == "__main__":
    key = jax.random.PRNGKey(0)
    x = jax.random.normal(key, (2, 4, 16, 16), dtype=jnp.float32)

    # Deterministic parameter init per module __init__ (unused in forward).
    weight = jnp.zeros((1, 1, 1, 1), jnp.float32)
    bias = jnp.ones((1, 1, 1, 1), jnp.float32)

    out = spatial_group_enhance(x, weight, bias)
    out = jax.block_until_ready(out)

    ref = _reference(x)
    assert jnp.isfinite(out)
    assert jnp.allclose(out, ref, rtol=1e-4, atol=1e-4), (out, ref)

    print("KERNEL_OK")
</pallas_src>

<mosaic_0001>
module attributes {stable_mosaic.version = 11 : i64} {
  func.func @_sge_stream_kernel(%arg0: i32, %arg1: i32, %arg2: memref<1x4x256xf32, #tpu.memory_space<vmem>>, %arg3: memref<1x1x256xf32, #tpu.memory_space<vmem>>) attributes {dimension_semantics = [#tpu.dimension_semantics<parallel>, #tpu.dimension_semantics<arbitrary>], iteration_bounds = array<i64: 2, 1>, scalar_prefetch = 0 : i64, scratch_operands = 0 : i64, tpu.core_type = #tpu.core_type<tc>, window_params = [{transform_indices = @transform_0, window_bounds = array<i64: 1, 4, 256>}, {transform_indices = @transform_1, window_bounds = array<i64: 1, 1, 256>}]} {
    %c0_i32 = arith.constant 0 : i32
    %0 = arith.cmpi eq, %arg1, %c0_i32 : i32
    %1 = arith.extui %0 : i1 to i32
    %c0_i32_0 = arith.constant 0 : i32
    %2 = arith.cmpi ne, %1, %c0_i32_0 : i32
    scf.if %2 {
      %cst_11 = arith.constant 0.000000e+00 : f32
      %17 = vector.broadcast %cst_11 : f32 to vector<1x1x256xf32>
      %c0_12 = arith.constant 0 : index
      %c0_13 = arith.constant 0 : index
      %c0_14 = arith.constant 0 : index
      %18 = vector.load %arg3[%c0_12, %c0_13, %c0_14] : memref<1x1x256xf32, #tpu.memory_space<vmem>>, vector<1x1x256xf32>
      tpu.vector_store %arg3[%c0_12, %c0_13, %c0_14], %17 {strides = array<i32>} : memref<1x1x256xf32, #tpu.memory_space<vmem>>, vector<1x1x256xf32>,
    } else {
    }
    %c0 = arith.constant 0 : index
    %c0_1 = arith.constant 0 : index
    %c0_2 = arith.constant 0 : index
    %3 = vector.load %arg2[%c0, %c0_1, %c0_2] : memref<1x4x256xf32, #tpu.memory_space<vmem>>, vector<1x4x256xf32>
    %4 = vector.shape_cast %3 : vector<1x4x256xf32> to vector<4x256xf32>
    %cst = arith.constant dense<0.000000e+00> : vector<4xf32>
    %5 = vector.multi_reduction <add>, %4, %cst [1] : vector<4x256xf32> to vector<4xf32>
    %6 = vector.shape_cast %5 : vector<4xf32> to vector<4x1xf32>
    %cst_3 = arith.constant 9.765625E-4 : f32
    %7 = vector.broadcast %cst_3 : f32 to vector<4x1xf32>
    %8 = arith.mulf %6, %7 : vector<4x1xf32>
    %9 = vector.shape_cast %8 : vector<4x1xf32> to vector<1x4xf32>
    %c0_4 = arith.constant 0 : index
    %c0_5 = arith.constant 0 : index
    %c0_6 = arith.constant 0 : index
    %10 = vector.load %arg3[%c0_4, %c0_5, %c0_6] : memref<1x1x256xf32, #tpu.memory_space<vmem>>, vector<1x1x256xf32>
    %11 = vector.shape_cast %10 : vector<1x1x256xf32> to vector<1x256xf32>
    %cst_7 = arith.constant dense<0.000000e+00> : vector<1x256xf32>
    %12 = tpu.matmul %9, %4, %cst_7 {dimension_numbers = #tpu.dot_dimension_numbers<[1], [0], [0], [1], [0, 0, 1, 1], [], []>} : vector<1x4xf32>, vector<4x256xf32>, vector<1x256xf32> -> vector<1x256xf32>
    %13 = arith.addf %11, %12 : vector<1x256xf32>
    %c0_8 = arith.constant 0 : index
    %c0_9 = arith.constant 0 : index
    %c0_10 = arith.constant 0 : index
    %14 = vector.load %arg3[%c0_8, %c0_9, %c0_10] : memref<1x1x256xf32, #tpu.memory_space<vmem>>, vector<1x1x256xf32>
    %15 = vector.shape_cast %14 : vector<1x1x256xf32> to vector<1x256xf32>
    %16 = vector.shape_cast %13 : vector<1x256xf32> to vector<1x1x256xf32>
    tpu.vector_store %arg3[%c0_8, %c0_9, %c0_10], %16 {strides = array<i32>} : memref<1x1x256xf32, #tpu.memory_space<vmem>>, vector<1x1x256xf32>,
    return
  }
  func.func @transform_0(%arg0: i32, %arg1: i32) -> (i32, i32, i32) {
    %c0_i32 = arith.constant 0 : i32
    %c0_i32_0 = arith.constant 0 : i32
    return %arg0, %arg1, %c0_i32 : i32, i32, i32
  }
  func.func @transform_1(%arg0: i32, %arg1: i32) -> (i32, i32, i32) {
    %c0_i32 = arith.constant 0 : i32
    %c0_i32_0 = arith.constant 0 : i32
    %c0_i32_1 = arith.constant 0 : i32
    return %arg0, %c0_i32, %c0_i32_0 : i32, i32, i32
  }
}

</mosaic_0001>

<bundles_post_ra>
// kernel: tpu_custom_call.1
= control target key start
LH: loop header
LB: loop body
LE: loop exit
PB: predicated region body
PF: predicated region fallthrough
CT: control target
= control target key end

     0   :  { %6 = vsyncpa [#allocation3], 0  ;;  %s727_s0 = inlined_call_operand.hbm [shape: f32[2,4,256], index: 0, kind: input, shape index: {}]   ;;  %s728_s1 = inlined_call_operand.hbm [shape: f32[2,1,256], index: 1, kind: output, shape index: {}]  }
   0x1   :  { %8 = vsyncpa [#allocation3 + $0x1], 0 }
   0x2   :  { %9 = vsyncpa [#allocation4], 0 }
   0x3   :  { %11 = vsyncpa [#allocation4 + $0x1], 0  ;;  %s584_s6 = smov 0   ;;  %s586_s7 = smov 0  }
   0x4   :  { %s588_s8 = smov 0   ;;  %s590_s9 = smov 0  }
   0x5   :  { %s592_s10 = smov 0   ;;  %s594_s11 = smov 0  }
   0x6 LB: > { %s375_s12 = sadd.s32 4294967295, %s568_s11   ;;  %s376_s13 = sadd.s32 4294967294, %s568_s11   ;;  %s568_s11 = sphi %s594_s11, %s17_s11   ;;  %s564_s10 = sphi %s592_s10, %s742_s10   ;;  %s560_s9 = sphi %s590_s9, %s741_s9   ;;  %s556_s8 = sphi %s588_s8, %s740_s8   ;;  %s552_s7 = sphi %s586_s7, %s739_s7   ;;  %s548_s6 = sphi %s584_s6, %s738_s6  }
   0x7   : > { %s29_s14 = sadd.s32 1, %s564_s10  ;;  %s38_s15 = sadd.s32 1, %s556_s8 }
   0x8   : > { %p31_p0 = scmp.ge.s32.totalorder %s29_s14, 2  ;;  %p45_p1 = scmp.ne.s32.totalorder %s556_s8, %s552_s7 }
   0x9   : > { %p46_p2 = scmp.eq.s32.totalorder %s568_s11, 0  ;;  %p51_p3 = scmp.ne.s32.totalorder %s552_s7, %s548_s6 }
   0xa   : > { %s744_s14 = smov (%p31_p0, %s29_s14), 0  ;;  %p52_p5 = scmp.eq.s32.totalorder %s375_s12, 0 }
   0xb   : > { %p625_p4 = por %p46_p2, %p45_p1  ;;  %s33_s17 = ssub.s32 %s564_s10, %s744_s14 }
   0xc   : > { %p75_p6 = scmp.eq.s32.totalorder %s375_s12, 1  ;;  %p36_p7 = scmp.eq.s32.totalorder %s33_s17, 0 }
   0xd   : > { %p631_p8 = por %p52_p5, %p51_p3  ;;  %p81_p10 = scmp.eq.s32.totalorder %s376_s13, 1 }
   0xe   : > { %p635_p9 = por %p75_p6, %p45_p1  ;;  %p407_p13 = scmp.lt.s32.totalorder %s568_s11, 2 }
   0xf   : > { %s640_s20 = scalar_select %p36_p7, %s556_s8, %s38_s15  }
  0x10   : > { %p642_p11 = por %p81_p10, %p51_p3  ;;  %s101_s22 = sand.u32 1, %s556_s8  }
  0x11   : > { %s379_s23 = sshll.u32 %s101_s22, 3  ;;  %s393_s24 = sshll.u32 %s564_s10, 7 }
  0x12   : > { %s732_s21 = scalar_select %p642_p11, 1, 0 }
  0x13   : > { %s113_s27 = scalar_lea.hbm %s727_s0, %s393_s24  ;;  %s105_s28 = scalar_lea.vmem [#allocation2], %s379_s23 }
  0x14   : > { %s115_s29 = sshll.u32 %s105_s28, 4  ;;  %p655_p0 = pnand %p407_p13, %p625_p4  ;;  %s116_s29 = int_to_ptr.vmem [resolvable:$true] %s115_s29 }
  0x15   : > { %p382_p1 = scmp.ge.s32.totalorder %s568_s11, 1  ;;  %p120_p2 = scmp.lt.s32.totalorder %s568_s11, 3 }
  0x16   : > { %s102_s2 = scalar_lea.sflag [#allocation3], %s101_s22  ;;  %p462_p3 = pneg %p655_p0 }
  0x17   : > { %s473_s3 = scalar_lea.vmem %s116_s29, 128  ;;  %s570_s4 = smov [#allocation2]  }
  0x18   : > { %p474_p5 = scmp.ne.s32.totalorder %s116_s29, %s473_s3  ;;  %s478_s5 = sshll.u32 %s570_s4, 4  ;;  %s479_s5 = int_to_ptr.vmem [resolvable:$false] %s478_s5 }
  0x19   : > { %s480_s12 = scalar_lea.vmem %s479_s5, 256  ;;  %p481_p10 = scmp.lt.s32.totalorder %s116_s29, %s479_s5 }
  0x1a   : > { %p476_p6 = pnand %p474_p5, %p462_p3  ;;  %p482_p12 = scmp.lt.s32.totalorder %s480_s12, %s473_s3 }
  0x1c   : > { %p477_p7 = pneg %p476_p6  ;;  %p483_p4 = por %p482_p12, %p481_p10 }
  0x1e   : > { %p484_p13 = pnand %p483_p4, %p477_p7 }
  0x20   : > { %487 = shalt.err (!%p484_p13)
}
  0x21   : > { %402 = dma.hbm_to_vmem [thread:$0]  (!%p655_p0), %s113_s27, 128, %s116_s29, %s102_s2  }
  0x22   : > { %p121_p11 = pnand %p382_p1, %p120_p2 }
  0x23   : > { %s670_s13 = sand.u32 (!%p121_p11), 1, %s552_s7  }
  0x24   : > { %124 = sbr.rel (%p121_p11) target bundleno = 406 (0x196), region = 24  ;;  %s383_s15 = sshll.u32 (!%p121_p11), %s670_s13, 3 }
  0x25   : > { %s127_s16 = scalar_lea.sflag (!%p121_p11), [#allocation3], %s670_s13  ;;  %s130_s17 = scalar_lea.vmem (!%p121_p11), [#allocation2], %s383_s15 }
  0x29   : > { %539 = dma.done.wait (%p631_p8), %s127_s16, 128  }
  0x2a   : > { %541 = vsyncadd (%p631_p8), %s127_s16, 4294967168  ;;  %vm162_vm0 = vcmask 1043456   ;;  %v158_v0 = vld [vmem:[%s130_s17] sm:$0xff]  ;;  %v153_v5 = vlaneseq  ;;  %s384_s22 = sshll.u32 %s670_s13, 1  ;;  %v571_v7 = vmov 0.0   ;;  %vm177_vm2 = vcmask 31744  }
  0x2b   : > { %v160_v1 = vcombine.high %v158_v0, %v158_v0  ;;  %v163_v2 = vsel %vm162_vm0, %v158_v0, 0.0  ;;  %248 = vmatprep.mubr.f32.mxu0 %v571_v7  ;;  %s148_s18 = scalar_lea.vmem [#allocation5], %s384_s22  ;;  %v572_v14 = vmov 1966171168   ;;  %s394_s23 = sshll.u32 %s560_s9, 5 }
  0x2c   : > { %vm679_vm1 = vcmp.lt.s32.totalorder %v153_v5, 256  ;;  %v172_v8 = vand.u32 127, %v153_v5  ;;  %v174_v9 = vshrl.u32 %v153_v5, 7  ;;  %v259_v15 = vunpack.c.l.s4 %v572_v14  ;;  %s294_s24 = sshll.u32 %s148_s18, 4  ;;  %s292_s27 = scalar_lea.hbm %s728_s1, %s394_s23  ;;  %s295_s24 = int_to_ptr.vmem [resolvable:$true] %s294_s24 }
  0x2d   : > { %v164_v3 = vsel %vm162_vm0, %v160_v1, 0.0  ;;  %385 = vmatprep.subr.msk.mxu0 %vm162_vm0, %v160_v1  ;;  %157 = vst.msk [vmem:[%s148_s18] sm:$0x3] %vm679_vm1, %v571_v7  ;;  %s280_s28 = scalar_lea.sflag [#allocation4], %s670_s13  ;;  %s488_s29 = scalar_lea.vmem %s295_s24, 32 }
  0x2e   : > { %v165_v4 = vadd.f32 %v164_v3, %v163_v2  ;;  %386 = vmatpush1.msk.msra.mxu0 %vm162_vm0, %v158_v0  ;;  %v175_v10 = vsub.s32 %v172_v8, %v174_v9  ;;  %v260_v16 = vunpack.c.0.s8 %v259_v15  ;;  %p489_p8 = scmp.ne.s32.totalorder %s295_s24, %s488_s29  ;;  %s573_s30 = smov [#allocation5]  }
  0x2f   : > { %s492_s2 = sshll.u32 %s573_s30, 4  ;;  %s493_s2 = int_to_ptr.vmem [resolvable:$false] %s492_s2 }
  0x30   : > { %166 = vadd.xlane.f32.xlu0 %v165_v4  ;;  %v263_v18 = vsub.s32 %v260_v16, %v174_v9  ;;  %p490_p11 = pnand %p489_p8, %p635_p9  ;;  %s494_s9 = scalar_lea.vmem %s493_s2, 64 }
  0x31   : > { %p495_p0 = scmp.lt.s32.totalorder %s295_s24, %s493_s2  ;;  %p496_p1 = scmp.lt.s32.totalorder %s494_s9, %s488_s29 }
  0x32   : > { %p491_p12 = pneg %p490_p11 }
  0x33   : > { %p497_p2 = por %p496_p1, %p495_p0 }
  0x34   : > { %v169_v22 = vld [vmem:[%s148_s18] sm:$0x3] }
  0x35   : > { %p498_p3 = pnand %p497_p2, %p491_p12 }
  0xb9   : > { %v167_v11 = vpop.xlane.xlu0 %166 }
  0xba   : > { %v168_v12 = vmul.f32 0.0009765625, %v167_v11 }
  0xbc   : > { %v176_v13 = vrot.slane %v168_v12, %v175_v10 }
  0xbe   : > { %387 = vmatmul.mubr.msk.f32.vlgmr.msra.gmra.mxu0 %vm177_vm2, %v176_v13 }
 0x17e   : > { %v250_v17 = vpop.f32.mrf.mxu0 }
 0x180   : > { %v252_v19 = vpop.f32.mrf.mxu0 }
 0x181   : > { %v257_v20 = vcombine.low %v250_v17, %v252_v19 }
 0x183   : > { %v264_v21 = vrot.slane %v257_v20, %v263_v18 }
 0x185   : > { %v271_v23 = vrot.slane %v264_v21, %v263_v18 }
 0x187   : > { %v273_v24 = vadd.f32 %v271_v23, %v169_v22 }
 0x189   : > { %278 = vst.msk [vmem:[%s148_s18] sm:$0x3] %vm679_vm1, %v273_v24 }
 0x18a   : > { %501 = shalt.err (!%p498_p3)
}
 0x18b   : > { %s502_s3 = scalar_lea.hbm %s292_s27, 32  ;;  %s506_s12 = scalar_lea.hbm %s728_s1, 64 }
 0x18c   : > { %p503_p5 = scmp.ne.s32.totalorder %s292_s27, %s502_s3  ;;  %p507_p10 = scmp.lt.s32.totalorder %s292_s27, %s728_s1 }
 0x18d   : > { %p508_p4 = scmp.lt.s32.totalorder %s506_s12, %s502_s3 }
 0x18e   : > { %p504_p6 = pnand %p503_p5, %p635_p9 }
 0x18f   : > { %p509_p13 = por %p508_p4, %p507_p10 }
 0x190   : > { %p505_p7 = pneg %p504_p6 }
 0x192   : > { %p510_p8 = pnand %p509_p13, %p505_p7 }
 0x194   : > { %513 = shalt.err (!%p510_p8)
}
 0x195   : > { %397 = dma.vmem_to_hbm [thread:$0]  (%p635_p9), %s295_s24, 32, %s292_s27, %s280_s28  }
 0x196 PF: > { %s306_s16 = sand.u32 1, %s548_s6   ;;  %p736_p11 = scmp.ne.s32.totalorder %s732_s21, 0 }
 0x197   : > { %p737_p12 = scmp.ge.s32.totalorder %s568_s11, 2  ;;  %s307_s17 = scalar_lea.sflag [#allocation4], %s306_s16 }
 0x199   : > { %p404_p0 = pnand %p737_p12, %p736_p11 }
 0x19b   : > { %p405_p1 = pneg %p404_p0 }
 0x19d   : > { %543 = dma.done.wait (%p405_p1), %s307_s17, 32  }
 0x19e   : > { %545 = vsyncadd (%p405_p1), %s307_s17, 4294967264  ;;  %s17_s11 = sadd.s32 1, %s568_s11   ;;  %s738_s6 = smov %s552_s7 }
 0x19f   : > { %p14_p2 = scmp.ge.s32.totalorder %s17_s11, 4   ;;  %s739_s7 = smov %s556_s8 }
 0x1a0   : > { %s740_s8 = smov %s640_s20  ;;  %s741_s9 = smov %s564_s10 }
 0x1a1   : > { %s742_s10 = smov %s744_s14  ;;  %16 = sbr.rel (!%p14_p2) target bundleno = 6 (0x6), region = 73 }
 0x1a6   :  { %312 = vsyncpa [#allocation3], 1 }
 0x1a7   :  { %314 = vsyncpa [#allocation3 + $0x1], 1 }
 0x1a8   :  { %315 = vsyncpa [#allocation4], 1 }
 0x1a9   :  { %317 = vsyncpa [#allocation4 + $0x1], 1 }

</bundles_post_ra>
